<compile_context>
chip_gen: v7x
topology: tpu7x:2x2x1
jax: 0.10.0
libtpu: 0.0.40
codegen_flags: <defaults>
</compile_context>

<pallas_src>
import jax
import jax.numpy as jnp
from jax.experimental import pallas as pl
from jax.experimental.pallas import tpu as pltpu

_IN = 784       # input features
_HID = 100      # true hidden width of the module
_HID_PAD = 128  # lane-aligned hidden width used inside the kernel


def d_net_kernel(x_ref, w1_ref, b1_ref, w2_ref, b2_ref, o_ref):
    # Layer 1: (tile_b, 784) bf16 @ (784, 128) bf16 on the MXU, f32 accumulate.
    h = jnp.dot(x_ref[...], w1_ref[...], preferred_element_type=jnp.float32)
    h = jnp.maximum(h + b1_ref[...], 0.0)                   # bias + ReLU (VPU, f32)
    # Layer 2: lane-wise multiply + cross-lane reduce (VPU + XLU; MXU stays free).
    y = jnp.sum(h * w2_ref[...], axis=-1, keepdims=True)    # (tile_b, 1)
    y = y + b2_ref[0, 0]                                     # scalar bias from SMEM
    o_ref[...] = jax.nn.sigmoid(y).astype(o_ref.dtype)


def _round_up(n, m):
    return ((n + m - 1) // m) * m


def prepare_params(w1, b1, w2, b2):
    """One-time weight prep (pad hidden 100->128, cast). Hoisted off the per-call path.

    Padding lanes are exact no-ops: relu(0 + 0) = 0 and the w2 pad is 0.
    """
    pad = _HID_PAD - _HID
    w1p = jnp.pad(w1.astype(jnp.float32), ((0, 0), (0, pad))).astype(jnp.bfloat16)
    b1p = jnp.pad(b1.reshape(1, _HID).astype(jnp.float32), ((0, 0), (0, pad)))
    w2row = jnp.pad(w2.reshape(1, _HID).astype(jnp.float32), ((0, 0), (0, pad)))
    b2s = b2.reshape(1, 1).astype(jnp.float32)
    return w1p, b1p, w2row, b2s


def d_net_forward(x, params, *, tile_b=2048):
    """x: (B, 784); params: output of prepare_params(). Returns (B, 1) float32."""
    w1p, b1p, w2row, b2s = params
    B, K = x.shape
    assert K == _IN and w1p.shape == (K, _HID_PAD)

    # Stream x in bf16 (dominant HBM stream). Ideally the producer emits bf16
    # directly so this cast fuses upstream / disappears.
    if x.dtype != jnp.bfloat16:
        x = x.astype(jnp.bfloat16)

    # Tile selection:
    #  * multiple of 16 (bf16 sublane packing),
    #  * >= 2 grid steps whenever B allows (v7x megacore gets both TCs busy),
    #  * as large as requested otherwise (amortize per-step grid overhead).
    # bf16 x at tile_b=2048: 2 buffers x 2048x784x2B ~= 6.4 MB -> well under the
    # 32 MiB scoped VMEM limit (valid on v5e/v6e/v7x) next to ~0.3 MB of weights.
    tile_b = max(16, min(_round_up(tile_b, 16), _round_up(pl.cdiv(B, 2), 16)))
    grid = (pl.cdiv(B, tile_b),)  # ragged last tile: Pallas masks the tail writeback

    return pl.pallas_call(
        d_net_kernel,
        out_shape=jax.ShapeDtypeStruct((B, 1), jnp.float32),
        grid=grid,
        in_specs=[
            pl.BlockSpec((tile_b, K), lambda i: (i, 0)),        # x: streamed per tile
            pl.BlockSpec((K, _HID_PAD), lambda i: (0, 0)),      # w1: VMEM-resident
            pl.BlockSpec((1, _HID_PAD), lambda i: (0, 0)),      # b1: resident
            pl.BlockSpec((1, _HID_PAD), lambda i: (0, 0)),      # w2 row: resident
            pl.BlockSpec(memory_space=pltpu.MemorySpace.SMEM),  # b2: scalar in SMEM
        ],
        out_specs=pl.BlockSpec((tile_b, 1), lambda i: (i, 0)),
        compiler_params=pltpu.CompilerParams(
            dimension_semantics=("parallel",),   # shard batch tiles over TCs on v7x
            vmem_limit_bytes=32 * 1024 * 1024,
        ),
    )(x, w1p, b1p, w2row, b2s)


def init_params(key):
    # PyTorch nn.Linear default init: U(-1/sqrt(fan_in), 1/sqrt(fan_in))
    k1, k2, k3, k4 = jax.random.split(key, 4)
    bound1 = 1.0 / jnp.sqrt(784.0)
    bound2 = 1.0 / jnp.sqrt(100.0)
    w1 = jax.random.uniform(k1, (_IN, _HID), jnp.float32, -bound1, bound1)
    b1 = jax.random.uniform(k2, (1, _HID), jnp.float32, -bound1, bound1)
    w2 = jax.random.uniform(k3, (_HID, 1), jnp.float32, -bound2, bound2)
    b2 = jax.random.uniform(k4, (1, 1), jnp.float32, -bound2, bound2)
    return w1, b1, w2, b2


if __name__ == "__main__":
    key = jax.random.PRNGKey(0)
    kx, kp = jax.random.split(key)
    w1, b1, w2, b2 = init_params(kp)

    # Hoisted, one-time weight prep (not on the per-forward critical path).
    params = prepare_params(w1, b1, w2, b2)
    fwd = jax.jit(d_net_forward, static_argnames=("tile_b",))

    def ref_f32(x):
        return jax.nn.sigmoid(jnp.maximum(x @ w1 + b1, 0.0) @ w2 + b2)

    def ref_bf16(x):  # reference with bf16-quantized matmul operands, f32 accumulate
        xb = x.astype(jnp.bfloat16).astype(jnp.float32)
        w1b = w1.astype(jnp.bfloat16).astype(jnp.float32)
        return jax.nn.sigmoid(jnp.maximum(xb @ w1b + b1, 0.0) @ w2 + b2)

    # B=20: ragged (20 % 16 != 0), clamp gives tile_b=16 -> 2-step grid (megacore path).
    x20 = jax.random.normal(jax.random.fold_in(kx, 20), (20, _IN), jnp.float32)
    out20 = jax.block_until_ready(fwd(x20, params))
    assert out20.shape == (20, 1)
    assert jnp.allclose(out20, ref_bf16(x20), atol=1e-3, rtol=1e-3)
    assert jnp.allclose(out20, ref_f32(x20), atol=2e-2, rtol=2e-2)  # bf16-loosened tol

    # B=50 with tile_b=16: 4-step pipelined grid with a ragged tail tile (50 = 48 + 2).
    x50 = jax.random.normal(jax.random.fold_in(kx, 50), (50, _IN), jnp.float32)
    out50 = jax.block_until_ready(fwd(x50, params, tile_b=16))
    assert out50.shape == (50, 1)
    assert jnp.allclose(out50, ref_bf16(x50), atol=1e-3, rtol=1e-3)
    assert jnp.allclose(out50, ref_f32(x50), atol=2e-2, rtol=2e-2)

    print("KERNEL_OK")
</pallas_src>

<mosaic_0001>
module attributes {stable_mosaic.version = 11 : i64} {
  func.func @d_net_kernel(%arg0: i32, %arg1: memref<16x784xbf16, #tpu.memory_space<vmem>>, %arg2: memref<784x128xbf16, #tpu.memory_space<vmem>>, %arg3: memref<1x128xf32, #tpu.memory_space<vmem>>, %arg4: memref<1x128xf32, #tpu.memory_space<vmem>>, %arg5: memref<1x1xf32, #tpu.memory_space<smem>>, %arg6: memref<16x1xf32, #tpu.memory_space<vmem>>) attributes {dimension_semantics = [#tpu.dimension_semantics<parallel>], iteration_bounds = array<i64: 2>, scalar_prefetch = 0 : i64, scratch_operands = 0 : i64, tpu.core_type = #tpu.core_type<tc>, window_params = [{transform_indices = @transform_0, window_bounds = array<i64: 16, 784>}, {pipeline_mode = #tpu.pipeline_mode<synchronous>, transform_indices = @transform_1, window_bounds = array<i64: 784, 128>}, {pipeline_mode = #tpu.pipeline_mode<synchronous>, transform_indices = @transform_2, window_bounds = array<i64: 1, 128>}, {pipeline_mode = #tpu.pipeline_mode<synchronous>, transform_indices = @transform_3, window_bounds = array<i64: 1, 128>}, {transform_indices = @transform_4, window_bounds = array<i64: 1, 1>}, {transform_indices = @transform_5, window_bounds = array<i64: 16, 1>}]} {
    %c0 = arith.constant 0 : index
    %c0_0 = arith.constant 0 : index
    %0 = vector.load %arg1[%c0, %c0_0] : memref<16x784xbf16, #tpu.memory_space<vmem>>, vector<16x784xbf16>
    %c0_1 = arith.constant 0 : index
    %c0_2 = arith.constant 0 : index
    %1 = vector.load %arg2[%c0_1, %c0_2] : memref<784x128xbf16, #tpu.memory_space<vmem>>, vector<784x128xbf16>
    %cst = arith.constant dense<0.000000e+00> : vector<16x128xf32>
    %2 = tpu.matmul %0, %1, %cst {dimension_numbers = #tpu.dot_dimension_numbers<[1], [0], [0], [1], [0, 0, 1, 1], [], []>} : vector<16x784xbf16>, vector<784x128xbf16>, vector<16x128xf32> -> vector<16x128xf32>
    %c0_3 = arith.constant 0 : index
    %c0_4 = arith.constant 0 : index
    %3 = vector.load %arg3[%c0_3, %c0_4] : memref<1x128xf32, #tpu.memory_space<vmem>>, vector<1x128xf32>
    %4 = vector.broadcast %3 : vector<1x128xf32> to vector<16x128xf32>
    %5 = arith.addf %2, %4 : vector<16x128xf32>
    %cst_5 = arith.constant 0.000000e+00 : f32
    %6 = vector.broadcast %cst_5 : f32 to vector<16x128xf32>
    %7 = arith.maximumf %5, %6 : vector<16x128xf32>
    %c0_6 = arith.constant 0 : index
    %c0_7 = arith.constant 0 : index
    %8 = vector.load %arg4[%c0_6, %c0_7] : memref<1x128xf32, #tpu.memory_space<vmem>>, vector<1x128xf32>
    %9 = vector.broadcast %8 : vector<1x128xf32> to vector<16x128xf32>
    %10 = arith.mulf %7, %9 : vector<16x128xf32>
    %cst_8 = arith.constant dense<0.000000e+00> : vector<16xf32>
    %11 = vector.multi_reduction <add>, %10, %cst_8 [1] : vector<16x128xf32> to vector<16xf32>
    %12 = vector.shape_cast %11 : vector<16xf32> to vector<16x1xf32>
    %c0_9 = arith.constant 0 : index
    %c0_10 = arith.constant 0 : index
    %13 = memref.load %arg5[%c0_9, %c0_10] : memref<1x1xf32, #tpu.memory_space<smem>>
    %14 = vector.broadcast %13 : f32 to vector<16x1xf32>
    %15 = arith.addf %12, %14 : vector<16x1xf32>
    %16 = arith.negf %15 : vector<16x1xf32>
    %17 = math.exp %16 : vector<16x1xf32>
    %cst_11 = arith.constant 1.000000e+00 : f32
    %18 = vector.broadcast %cst_11 : f32 to vector<16x1xf32>
    %19 = arith.addf %18, %17 : vector<16x1xf32>
    %20 = arith.divf %18, %19 : vector<16x1xf32>
    %c0_12 = arith.constant 0 : index
    %c0_13 = arith.constant 0 : index
    %21 = vector.load %arg6[%c0_12, %c0_13] : memref<16x1xf32, #tpu.memory_space<vmem>>, vector<16x1xf32>
    tpu.vector_store %arg6[%c0_12, %c0_13], %20 {strides = array<i32>} : memref<16x1xf32, #tpu.memory_space<vmem>>, vector<16x1xf32>,
    return
  }
  func.func @transform_0(%arg0: i32) -> (i32, i32) {
    %c0_i32 = arith.constant 0 : i32
    %c0_i32_0 = arith.constant 0 : i32
    return %arg0, %c0_i32 : i32, i32
  }
  func.func @transform_1(%arg0: i32) -> (i32, i32) {
    %c0_i32 = arith.constant 0 : i32
    %c0_i32_0 = arith.constant 0 : i32
    %c0_i32_1 = arith.constant 0 : i32
    return %c0_i32, %c0_i32_0 : i32, i32
  }
  func.func @transform_2(%arg0: i32) -> (i32, i32) {
    %c0_i32 = arith.constant 0 : i32
    %c0_i32_0 = arith.constant 0 : i32
    %c0_i32_1 = arith.constant 0 : i32
    return %c0_i32, %c0_i32_0 : i32, i32
  }
  func.func @transform_3(%arg0: i32) -> (i32, i32) {
    %c0_i32 = arith.constant 0 : i32
    %c0_i32_0 = arith.constant 0 : i32
    %c0_i32_1 = arith.constant 0 : i32
    return %c0_i32, %c0_i32_0 : i32, i32
  }
  func.func @transform_4(%arg0: i32) -> (i32, i32) {
    %c0_i32 = arith.constant 0 : i32
    %c0_i32_0 = arith.constant 0 : i32
    %c0_i32_1 = arith.constant 0 : i32
    return %c0_i32, %c0_i32_0 : i32, i32
  }
  func.func @transform_5(%arg0: i32) -> (i32, i32) {
    %c0_i32 = arith.constant 0 : i32
    %c0_i32_0 = arith.constant 0 : i32
    return %arg0, %c0_i32 : i32, i32
  }
}

</mosaic_0001>

<bundles_post_ra>
// kernel: d_net_forward.1
= control target key start
LH: loop header
LB: loop body
LE: loop exit
PB: predicated region body
PF: predicated region fallthrough
CT: control target
= control target key end

     0   :  { %s1772_s0 = inlined_call_operand.vmem [shape: bf16[20,784], index: 0, kind: input, shape index: {}]   ;;  %s1773_s1 = inlined_call_operand.hbm [shape: bf16[784,128], index: 1, kind: input, shape index: {}]   ;;  %s1774_s2 = inlined_call_operand.vmem [shape: f32[1,128], index: 2, kind: input, shape index: {}]   ;;  %s1775_s3 = inlined_call_operand.vmem [shape: f32[1,128], index: 3, kind: input, shape index: {}]   ;;  %s1776_s4 = inlined_call_operand.<no memory space> [shape: f32[1,1], index: 4, kind: input, shape index: {}]   ;;  %s1777_s5 = inlined_call_operand.vmem [shape: f32[20,1], index: 5, kind: output, shape index: {}]  }
   0x1   :  { %10 = sst [smem:[#allocation2]] %s1776_s4 }
   0x2   :  { %11 = vsyncpa [#allocation4], 0  ;;  %s1639_s20 = smov 0   ;;  %s1641_s21 = smov 0  }
   0x3   :  { %s1643_s22 = smov 0  }
   0x4 LB: > { %s1652_s4 = sadd.s32 4294967295, %s1567_s22   ;;  %s1654_s23 = sadd.s32 1, %s1567_s22   ;;  %s1567_s22 = sphi %s1643_s22, %s1789_s22   ;;  %s1563_s21 = sphi %s1641_s21, %s1788_s21   ;;  %s1559_s20 = sphi %s1639_s20, %s1787_s20  }
   0x5   : > { %s131_s24 = ssub.s32 %s1567_s22, %s1654_s23  ;;  %s134_s25 = sadd.s32 1, %s1563_s21 }
   0x6   : > { %p132_p0 = scmp.eq.s32.totalorder %s131_s24, 0  ;;  %p144_p1 = scmp.ne.s32.totalorder %s1563_s21, %s1559_s20 }
   0x7   : > { %p145_p2 = scmp.eq.s32.totalorder %s1652_s4, 1  ;;  %p1147_p3 = scmp.ge.s32.totalorder %s1567_s22, 1 }
   0x8   : > { %s1662_s26 = scalar_select %p132_p0, %s1563_s21, %s134_s25  }
   0x9   : > { %p1664_p4 = por %p145_p2, %p144_p1  ;;  %p158_p5 = scmp.lt.s32.totalorder %s1567_s22, 3 }
   0xa   : > { %p1778_p6 = scmp.eq.s32.totalorder %s1652_s4, 0  ;;  %s1601_s29 = smov [#allocation3]  }
   0xb   : > { %s1780_s27 = scalar_select %p1664_p4, 1, 0 }
   0xc   : > { %p1669_p7 = pnand %p1147_p3, %p158_p5  ;;  %s170_s30 = sshll.u32 %s1601_s29, 4  ;;  %s171_s30 = int_to_ptr.vmem [resolvable:$true] %s170_s30 }
   0xd   : > { %s1481_s9 = scalar_lea.hbm %s1773_s1, 6272 }
   0xe   : > { %s1781_s28 = scalar_select %p1669_p7, 1, 0 }
   0xf   : > { %p1315_p8 = pneg %p1669_p7  ;;  %p1482_p10 = scmp.ne.s32.totalorder %s1773_s1, %s1481_s9 }
  0x10   : > { %p1488_p0 = scmp.lt.u32.totalorder %s1481_s9, %s1773_s1 }
  0x11   : > { %p1677_p9 = pnand %p1778_p6, %p1315_p8 }
  0x13   : > { %p1483_p11 = pneg %p1677_p9 }
  0x15   : > { %p1484_p12 = pnand %p1483_p11, %p1482_p10 }
  0x17   : > { %p1485_p13 = pneg %p1484_p12 }
  0x19   : > { %p1490_p1 = pnand %p1488_p0, %p1485_p13 }
  0x1b   : > { %1493 = shalt.err (!%p1490_p1)
}
  0x1c   : > { %s1494_s14 = scalar_lea.vmem %s171_s30, 6272  ;;  %p1502_p8 = scmp.lt.s32.totalorder %s171_s30, %s171_s30 }
  0x1d   : > { %p1495_p2 = scmp.ne.s32.totalorder %s171_s30, %s1494_s14  ;;  %p1503_p6 = scmp.lt.s32.totalorder %s1494_s14, %s1494_s14 }
  0x1f   : > { %p1497_p3 = pnand %p1495_p2, %p1483_p11  ;;  %p1504_p4 = por %p1503_p6, %p1502_p8 }
  0x21   : > { %p1498_p5 = pneg %p1497_p3 }
  0x23   : > { %p1505_p7 = pnand %p1504_p4, %p1498_p5 }
  0x25   : > { %1508 = shalt.err (!%p1505_p7)
}
  0x26   : > { %s1602_s15 = smov 64   ;;  %s1603_s16 = smov 4  }
  0x27   : > { %1318 = dma.hbm_to_vmem [thread:$0]  (!%p1677_p9), %s1773_s1, 6272, %s171_s30, [#allocation4], %s1602_s15, %s1602_s15, %s1603_s16  }
  0x28   : > { %p1783_p10 = scmp.ne.s32.totalorder %s1781_s28, 0 }
  0x29   : > { %p1784_p12 = scmp.eq.s32.totalorder (!%p1783_p10), %s1652_s4, 0 }
  0x2a   : > { %215 = sbr.rel (%p1783_p10) target bundleno = 562 (0x232), region = 40 }
  0x31   : > { %1554 = dma.done.wait (%p1784_p12), [#allocation4], 6272   ;;  %p1785_p11 = pmov %p1784_p12 }
  0x32   : > { %v1414_v0 = vld [vmem:[#allocation3 + $0x40] sm:$0xff]   ;;  %v1418_v4 = vld [vmem:[#allocation3 + $0x48] sm:$0xff]   ;;  %v1422_v8 = vld [vmem:[#allocation3 + $0x50] sm:$0xff]   ;;  %s1704_s19 = sshll.u32 %s1652_s4, 1  ;;  %v1604_v38 = vmov 0.0   ;;  %vm1605_vm0 = vmmov 0  }
  0x33   : > { %1556 = vsyncadd (%p1785_p11), [#allocation4], 4294961024  ;;  %v1415_v1 = vld [vmem:[#allocation3] sm:$0xff]   ;;  %1236 = vmatprep.subr.bf16.mxu0 %v1414_v0  ;;  %v1419_v5 = vld [vmem:[#allocation3 + $0x8] sm:$0xff]   ;;  %p254_p4 = scmp.lt.s32.totalorder %s1704_s19, 2  ;;  %vm713_vm1 = vcmask 130048  }
  0x34   : > { %v1416_v2 = vld [vmem:[#allocation3 + $0xc0] sm:$0xff]   ;;  %1237 = vmatpush3.bf16.msra.mxu0 %v1415_v1  ;;  %v1420_v6 = vld [vmem:[#allocation3 + $0xc8] sm:$0xff]   ;;  %v1423_v9 = vld [vmem:[#allocation3 + $0x10] sm:$0xff]   ;;  %s896_s9 = sld [smem:[#allocation2]]  ;;  %s245_s10 = sand.u32 1, %s1559_s20   ;;  %vm912_vm2 = vcmask 7168  }
  0x35   : > { %v1417_v3 = vld [vmem:[#allocation3 + $0x80] sm:$0xff]   ;;  %1258 = vmatprep.subr.bf16.mxu1 %v1416_v2  ;;  %1238 = vmatprep.subr.bf16.mxu0 %v1418_v4  ;;  %v1421_v7 = vld [vmem:[#allocation3 + $0x88] sm:$0xff]   ;;  %v1424_v10 = vld [vmem:[#allocation3 + $0xd0] sm:$0xff]   ;;  %s255_s22 = scalar_select %p254_p4, %s1704_s19, 2 }
  0x36   : > { %1259 = vmatpush3.bf16.msra.mxu1 %v1417_v3  ;;  %v1425_v11 = vld [vmem:[#allocation3 + $0x90] sm:$0xff]   ;;  %v1426_v12 = vld [vmem:[#allocation3 + $0x58] sm:$0xff]   ;;  %v1430_v16 = vld [vmem:[#allocation3 + $0x60] sm:$0xff]   ;;  %s1152_s11 = sshll.u32 %s245_s10, 4  ;;  %p1786_p6 = scmp.ne.s32.totalorder %s1780_s27, 0 }
  0x37   : > { %1260 = vmatprep.subr.bf16.mxu1 %v1420_v6  ;;  %v1427_v13 = vld [vmem:[#allocation3 + $0x18] sm:$0xff]   ;;  %v1431_v17 = vld [vmem:[#allocation3 + $0x20] sm:$0xff]   ;;  %v1434_v20 = vld [vmem:[#allocation3 + $0x68] sm:$0xff]   ;;  %s1310_s24 = smul.u32 28, %s255_s22  ;;  %s1727_s12 = scalar_lea.vmem [#allocation5], %s1152_s11  }
  0x38   : > { %1239 = vmatpush3.bf16.msra.mxu0 %v1419_v5  ;;  %v1428_v14 = vld [vmem:[#allocation3 + $0xd8] sm:$0xff]   ;;  %v1432_v18 = vld [vmem:[#allocation3 + $0xe0] sm:$0xff]   ;;  %v1435_v21 = vld [vmem:[#allocation3 + $0x28] sm:$0xff]   ;;  %s923_s13 = ssub.s32 (%p1786_p6), 3, %s1704_s19  ;;  %s1233_s14 = sshll.u32 (%p1786_p6), %s1652_s4, 4 }
  0x39   : > { %1240 = vmatprep.subr.bf16.mxu0 %v1422_v8  ;;  %v1429_v15 = vld [vmem:[#allocation3 + $0x98] sm:$0xff]   ;;  %v1433_v19 = vld [vmem:[#allocation3 + $0xa0] sm:$0xff]   ;;  %v1436_v22 = vld [vmem:[#allocation3 + $0xe8] sm:$0xff]   ;;  %s1711_s29 = scalar_lea.vmem %s1772_s0, %s1310_s24  ;;  %p924_p7 = scmp.lt.s32.totalorder (%p1786_p6), %s923_s13, 2 }
  0x3a   : > { %1261 = vmatpush3.bf16.msra.mxu1 %v1421_v7  ;;  %v1437_v23 = vld [vmem:[#allocation3 + $0xa8] sm:$0xff]   ;;  %v1438_v24 = vld [vmem:[#allocation3 + $0x70] sm:$0xff]   ;;  %v1442_v28 = vld [vmem:[#allocation3 + $0x78] sm:$0xff]   ;;  %s1738_s16 = scalar_lea.vmem (%p1786_p6), %s1777_s5, %s1233_s14  }
  0x3b   : > { %1262 = vmatprep.subr.bf16.mxu1 %v1424_v10  ;;  %v1439_v25 = vld [vmem:[#allocation3 + $0x30] sm:$0xff]   ;;  %v1443_v29 = vld [vmem:[#allocation3 + $0x38] sm:$0xff]   ;;  %v1447_v32 = vld [vmem:[%s1711_s29 + $0x4] ss:$28 sps:$4 sm:$0xff]  }
  0x3c   : > { %1241 = vmatpush3.bf16.msra.mxu0 %v1423_v9  ;;  %v1440_v26 = vld [vmem:[#allocation3 + $0xf0] sm:$0xff]   ;;  %v1444_v30 = vld [vmem:[#allocation3 + $0xf8] sm:$0xff]   ;;  %749 = vmatprep.mubr.bf16.mxu0 %v1447_v32  ;;  %v1449_v34 = vld [vmem:[#allocation3 + $0x140] sm:$0xff]  }
  0x3d   : > { %1242 = vmatprep.subr.bf16.mxu0 %v1426_v12  ;;  %v1441_v27 = vld [vmem:[#allocation3 + $0xb0] sm:$0xff]   ;;  %v1445_v31 = vld [vmem:[%s1711_s29] ss:$28 sps:$4 sm:$0xff]   ;;  %v1450_v35 = vld [vmem:[%s1711_s29 + $0x8] ss:$28 sps:$4 sm:$0xff]  }
  0x3e   : > { %1263 = vmatpush3.bf16.msra.mxu1 %v1425_v11  ;;  %v1448_v33 = vld [vmem:[#allocation3 + $0xb8] sm:$0xff]   ;;  %v1452_v36 = vld [vmem:[%s1711_s29 + $0xc] ss:$28 sps:$4 sm:$0xff]   ;;  %v1453_v37 = vld [vmem:[#allocation3 + $0x100] sm:$0xff]  }
  0x3f   : > { %1264 = vmatprep.subr.bf16.mxu1 %v1428_v14  ;;  %790 = vmatprep.mubr.bf16.mxu1 %v1452_v36  ;;  %v1454_v39 = vld [vmem:[#allocation3 + $0x148] sm:$0xff]   ;;  %v1456_v41 = vld [vmem:[#allocation3 + $0x150] sm:$0xff]   ;;  %v1458_v43 = vld [vmem:[#allocation3 + $0x158] sm:$0xff]  }
  0x40   : > { %1243 = vmatpush3.bf16.msra.mxu0 %v1427_v13  ;;  %v1455_v40 = vld [vmem:[#allocation3 + $0x108] sm:$0xff]   ;;  %v1457_v42 = vld [vmem:[#allocation3 + $0x110] sm:$0xff]   ;;  %v1459_v44 = vld [vmem:[#allocation3 + $0x118] sm:$0xff]  }
  0x41   : > { %1244 = vmatprep.subr.bf16.mxu0 %v1430_v16  ;;  %v1460_v45 = vld [vmem:[#allocation3 + $0x160] sm:$0xff]   ;;  %v1462_v47 = vld [vmem:[#allocation3 + $0x168] sm:$0xff]   ;;  %v1471_v49 = vld [vmem:[%s1711_s29 + $0x14] ss:$28 sps:$4 sm:$0xff]  }
  0x42   : > { %1265 = vmatpush3.bf16.msra.mxu1 %v1429_v15  ;;  %v1461_v46 = vld [vmem:[#allocation3 + $0x120] sm:$0xff]   ;;  %v1472_v50 = vld [vmem:[%s1711_s29 + $0x18] ss:$28 sps:$4 sm:$0xff]   ;;  %v1463_v51 = vld [vmem:[#allocation3 + $0x128] sm:$0xff]  }
  0x43   : > { %1266 = vmatprep.subr.bf16.mxu1 %v1432_v18  ;;  %v1468_v48 = vld [vmem:[#allocation3 + $0x180] sm:$0xff]   ;;  %v1464_v52 = vld [vmem:[#allocation3 + $0x170] sm:$0xff]   ;;  %v1466_v54 = vld [vmem:[#allocation3 + $0x178] sm:$0xff]  }
  0x44   : > { %1245 = vmatpush3.bf16.msra.mxu0 %v1431_v17  ;;  %v1465_v53 = vld [vmem:[#allocation3 + $0x130] sm:$0xff]   ;;  %v1467_v55 = vld [vmem:[#allocation3 + $0x138] sm:$0xff]   ;;  %v1155_v58 = vld [vmem:[%s1774_s2] ss:$0 sm:$0xff] }
  0x45   : > { %1246 = vmatprep.subr.bf16.mxu0 %v1434_v20  ;;  %v1469_v56 = vld [vmem:[%s1711_s29 + $0x10] ss:$28 sps:$4 sm:$0xff]  }
  0x46   : > { %1267 = vmatpush3.bf16.msra.mxu1 %v1433_v19 }
  0x47   : > { %1268 = vmatprep.subr.bf16.mxu1 %v1436_v22 }
  0x48   : > { %1247 = vmatpush3.bf16.msra.mxu0 %v1435_v21 }
  0x49   : > { %1248 = vmatprep.subr.bf16.mxu0 %v1438_v24 }
  0x4a   : > { %1269 = vmatpush3.bf16.msra.mxu1 %v1437_v23  ;;  %v1213_v23 = vld [vmem:[%s1775_s3] ss:$0 sm:$0xff] }
  0x4b   : > { %1270 = vmatprep.subr.bf16.mxu1 %v1440_v26 }
  0x4c   : > { %1249 = vmatpush3.bf16.msra.mxu0 %v1439_v25 }
  0x4d   : > { %1250 = vmatprep.subr.bf16.mxu0 %v1442_v28 }
  0x4e   : > { %1271 = vmatpush3.bf16.msra.mxu1 %v1441_v27 }
  0x4f   : > { %1272 = vmatprep.subr.bf16.mxu1 %v1444_v30 }
  0x50   : > { %1251 = vmatpush3.bf16.msra.mxu0 %v1443_v29  ;;  %v897_v29 = vstv %s896_s9 }
  0x51   : > { %1280 = vmatprep.subr.bf16.mxu0 %v1449_v34 }
  0x52   : > { %1273 = vmatpush3.bf16.msra.mxu1 %v1448_v33 }
  0x53   : > { %750 = vmatmul.mubr.bf16.vlgmr.msra.gmra.mrb[0].mxu0 %v1445_v31  ;;  %1304 = vmatprep.subr.bf16.mxu1 %v1604_v38 }
  0x54   : > { %1281 = vmatpush3.bf16.msra.mxu0 %v1453_v37  ;;  %831 = vmatprep.mubr.bf16.mxu0 %v1471_v49 }
  0x55   : > { %791 = vmatmul.mubr.bf16.vlgmr.msra.gmra.mrb[0].mxu1 %v1450_v35  ;;  %1282 = vmatprep.subr.bf16.mxu0 %v1454_v39 }
  0x56   : > { %1306 = vmatprep.mubr.msk.bf16.mxu1 %vm1605_vm0, %v1604_v38  ;;  %1305 = vmatpush3.bf16.msra.mxu1 %v1468_v48 }
  0x58   : > { %1283 = vmatpush3.bf16.msra.mxu0 %v1455_v40 }
  0x59   : > { %1284 = vmatprep.subr.bf16.mxu0 %v1456_v41 }
  0x5c   : > { %1285 = vmatpush3.bf16.msra.mxu0 %v1457_v42 }
  0x5d   : > { %1286 = vmatprep.subr.bf16.mxu0 %v1458_v43  ;;  %1307 = vmatmul.mubr.msk.bf16.vlgmr.msra.gmra.mrb[4].mxu1 %vm713_vm1, %v1472_v50 }
  0x60   : > { %1287 = vmatpush3.bf16.msra.mxu0 %v1459_v44 }
  0x61   : > { %1288 = vmatprep.subr.bf16.mxu0 %v1460_v45 }
  0x64   : > { %1289 = vmatpush3.bf16.msra.mxu0 %v1461_v46 }
  0x65   : > { %1290 = vmatprep.subr.bf16.mxu0 %v1462_v47 }
  0x68   : > { %1291 = vmatpush3.bf16.msra.mxu0 %v1463_v51 }
  0x69   : > { %1292 = vmatprep.subr.bf16.mxu0 %v1464_v52 }
  0x6c   : > { %1293 = vmatpush3.bf16.msra.mxu0 %v1465_v53 }
  0x6d   : > { %1294 = vmatprep.subr.bf16.mxu0 %v1466_v54 }
  0x70   : > { %1295 = vmatpush3.bf16.msra.mxu0 %v1467_v55 }
  0x73   : > { %832 = vmatmul.mubr.bf16.vlgmr.msra.gmra.mrb[4].mxu0 %v1469_v56 }
 0x126   : > { %v1252_v57 = vpop.f32.mrb[0].mxu0 }
 0x127   : > { %v1253_v59 = vpop.f32.mrb[1].mxu0 }
 0x128   : > { %v1254_v60 = vadd.f32 %v1253_v59, %v1252_v57  ;;  %v1255_v61 = vpop.f32.mrb[2].mxu0  ;;  %v1274_v62 = vpop.f32.mrb[0].mxu1 }
 0x129   : > { %v1256_v63 = vpop.f32.mrb[3].mxu0  ;;  %v1275_v2 = vpop.f32.mrb[1].mxu1 }
 0x12a   : > { %v752_v0 = vadd.f32 %v1254_v60, %v1155_v58  ;;  %v1257_v1 = vadd.f32 %v1256_v63, %v1255_v61  ;;  %v1276_v3 = vadd.f32 %v1275_v2, %v1274_v62  ;;  %v1277_v4 = vpop.f32.mrb[2].mxu1 }
 0x12b   : > { %v1278_v6 = vpop.f32.mrb[3].mxu1 }
 0x12c   : > { %v755_v5 = vadd.f32 %v1257_v1, %v1155_v58  ;;  %v793_v7 = vadd.f32 %v1276_v3, %v752_v0  ;;  %v1279_v8 = vadd.f32 %v1278_v6, %v1277_v4 }
 0x12e   : > { %v796_v9 = vadd.f32 %v1279_v8, %v755_v5 }
 0x130   : > { %v874_v10 = vpop.f32.mrb[4].mxu1 }
 0x131   : > { %v1308_v11 = vpop.f32.mrb[5].mxu1 }
 0x132   : > { %v877_v12 = vpop.f32.mrb[6].mxu1 }
 0x133   : > { %v1309_v13 = vpop.f32.mrb[7].mxu1 }
 0x146   : > { %v1296_v14 = vpop.f32.mrb[4].mxu0 }
 0x147   : > { %v1297_v15 = vpop.f32.mrb[5].mxu0 }
 0x148   : > { %v1298_v16 = vadd.f32 %v1297_v15, %v1296_v14  ;;  %v1299_v17 = vpop.f32.mrb[6].mxu0 }
 0x149   : > { %v1300_v18 = vpop.f32.mrb[7].mxu0 }
 0x14a   : > { %v834_v19 = vadd.f32 %v1298_v16, %v793_v7  ;;  %v1301_v20 = vadd.f32 %v1300_v18, %v1299_v17 }
 0x14c   : > { %v875_v21 = vadd.f32 %v874_v10, %v834_v19  ;;  %v837_v22 = vadd.f32 %v1301_v20, %v796_v9 }
 0x14e   : > { %v881_v24 = vmax.f32 %v875_v21, 0.0  ;;  %v878_v25 = vadd.f32 %v877_v12, %v837_v22 }
 0x150   : > { %v882_v26 = vmax.f32 %v878_v25, 0.0  ;;  %v890_v27 = vmul.f32 %v1213_v23, %v881_v24 }
 0x152   : > { %892 = vadd.xlane.f32.xlu0 %v890_v27  ;;  %v891_v28 = vmul.f32 %v1213_v23, %v882_v26 }
 0x156   : > { %894 = vadd.xlane.f32.xlu0 %v891_v28 }
 0x1df   : > { %v893_v30 = vpop.xlane.xlu0 %892 }
 0x1e0   : > { %v898_v31 = vadd.f32 %v897_v29, %v893_v30 }
 0x1e2   : > { %v1214_v32 = vmul.f32 -1.442695, %v898_v31 }
 0x1e3   : > { %v895_v33 = vpop.xlane.xlu0 %894 }
 0x1e4   : > { %1473 = vpow2.f32 %v1214_v32  ;;  %v899_v34 = vadd.f32 %v897_v29, %v895_v33 }
 0x1e6   : > { %v1215_v35 = vmul.f32 -1.442695, %v899_v34 }
 0x1e8   : > { %1475 = vpow2.f32 %v1215_v35 }
 0x1ee   : > { %v1474_v36 = vpop.eup %1473 }
 0x1ef   : > { %v906_v37 = vadd.f32 1.0, %v1474_v36 }
 0x1f1   : > { %1477 = vrcp.f32 %v906_v37 }
 0x1f2   : > { %v1476_v38 = vpop.eup %1475 }
 0x1f3   : > { %v907_v39 = vadd.f32 1.0, %v1476_v38 }
 0x1f5   : > { %1479 = vrcp.f32 %v907_v39 }
 0x1fa   : > { %921 = sbr.rel (!%p1786_p6) target bundleno = 562 (0x232), region = 48 }
 0x1fb   : > { %v1478_v40 = vpop.eup %1477 }
 0x1fc   : > { %913 = vst.msk [vmem:[%s1727_s12] sm:$0xff] %vm912_vm2, %v1478_v40 }
 0x1ff   : > { %v1480_v41 = vpop.eup %1479 }
 0x200   : > { %914 = vst.msk [vmem:[%s1727_s12 + $0x8] sm:$0xff] %vm912_vm2, %v1480_v41 }
 0x201   : > { %s1791_s13 = smov (!%p924_p7, %s923_s13), 2 }
 0x202   : > { %s1218_s17 = sshll.u32 %s1791_s13, 7 }
 0x203   : > { %p1221_p9 = scmp.eq.s32.totalorder %s1218_s17, 0 }
 0x204   : > { %s1744_s18 = sshrl.u32 (!%p1221_p9), %s1791_s13, 1 }
 0x205   : > { %932 = sbr.rel (%p1221_p9) target bundleno = 562 (0x232), region = 52  ;;  %p1222_p13 = scmp.le.s32.totalorder (!%p1221_p9), %s1744_s18, 0 }
 0x20c   : > { %1093 = sbr.rel (%p1222_p13) target bundleno = 541 (0x21d), region = 129  ;;  %s1569_s4 = smov (!%p1222_p13), %s1738_s16  }
 0x20d   : > { %s1573_s27 = smov (!%p1222_p13), %s1727_s12   ;;  %s1577_s19 = smov (!%p1222_p13), 0  }
 0x20e   : > { %s1581_s22 = smov (!%p1222_p13), 0  }
 0x213 LB: >> { %v996_v42 = vld [vmem:[%s1575_s27] sm:$0xff]  ;;  %v998_v43 = vld [vmem:[%s1575_s27 + $0x8] sm:$0xff]  ;;  %s1000_s24 = sadd.s32 1, %s1579_s19  ;;  %s990_s22 = sadd.s32 1, %s1583_s22   ;;  %s1583_s22 = sphi %s1581_s22, %s990_s22   ;;  %s1579_s19 = sphi %s1577_s19, %s1578_s19   ;;  %s1575_s27 = sphi %s1573_s27, %s1005_s27   ;;  %s1571_s4 = sphi %s1569_s4, %s1006_s4  }
 0x214   : >> { %997 = vst [vmem:[%s1571_s4] sm:$0xff] %v996_v42  ;;  %999 = vst [vmem:[%s1571_s4 + $0x8] sm:$0xff] %v998_v43  ;;  %p1001_p0 = scmp.ge.s32.totalorder %s1000_s24, %s1744_s18  ;;  %p989_p1 = scmp.ge.s32.totalorder %s990_s22, %s1744_s18 }
 0x216   : >> { %s1793_s24 = smov (%p1001_p0, %s1000_s24), 0  ;;  %992 = sbr.rel (!%p989_p1) target bundleno = 531 (0x213), region = 135 }
 0x217   : >> { %s1223_s25 = sshll.u32 %s1793_s24, 4  ;;  %s1578_s19 = smov %s1793_s24  }
 0x218   : >> { %s1005_s27 = scalar_lea.vmem %s1727_s12, %s1223_s25 [#allocation5]   ;;  %s1006_s4 = scalar_lea.vmem %s1738_s16, %s1223_s25  }
 0x21d PF: > { %s1754_s28 = sand.u32 1, %s1791_s13   ;;  %s1234_s29 = sshll.u32 %s1744_s18, 4 }
 0x21e   : > { %s1011_s30 = scalar_lea.vmem %s1727_s12, %s1234_s29 [#allocation5]   ;;  %s1013_s6 = scalar_lea.vmem %s1738_s16, %s1234_s29  }
 0x21f   : > { %p1228_p2 = scmp.le.s32.totalorder %s1754_s28, 0 }
 0x220   : > { %s1585_s7 = smov (!%p1228_p2), %s1013_s6   ;;  %s1589_s8 = smov (!%p1228_p2), %s1011_s30  }
 0x221   : > { %1107 = sbr.rel (%p1228_p2) target bundleno = 562 (0x232), region = 140  ;;  %s1593_s9 = smov (!%p1228_p2), 0  }
 0x222   : > { %s1597_s10 = smov (!%p1228_p2), 0  }
 0x228 LB: >> { %v1023_v44 = vld [vmem:[%s1591_s8] sm:$0xff]  ;;  %s1025_s11 = sadd.s32 1, %s1595_s9  ;;  %s1017_s10 = sadd.s32 1, %s1599_s10   ;;  %s1599_s10 = sphi %s1597_s10, %s1017_s10   ;;  %s1595_s9 = sphi %s1593_s9, %s1594_s9   ;;  %s1591_s8 = sphi %s1589_s8, %s1030_s8   ;;  %s1587_s7 = sphi %s1585_s7, %s1031_s7  }
 0x229   : >> { %1024 = vst [vmem:[%s1587_s7] sm:$0xff] %v1023_v44  ;;  %p1026_p3 = scmp.ge.s32.totalorder %s1025_s11, %s1754_s28  ;;  %p1016_p5 = scmp.ge.s32.totalorder %s1017_s10, %s1754_s28 }
 0x22b   : >> { %s1795_s11 = smov (%p1026_p3, %s1025_s11), 0  ;;  %1019 = sbr.rel (!%p1016_p5) target bundleno = 552 (0x228), region = 146 }
 0x22c   : >> { %s1229_s12 = sshll.u32 %s1795_s11, 3  ;;  %s1594_s9 = smov %s1795_s11  }
 0x22d   : >> { %s1030_s8 = scalar_lea.vmem %s1011_s30, %s1229_s12 [#allocation5]   ;;  %s1031_s7 = scalar_lea.vmem %s1013_s6, %s1229_s12  }
 0x232 PF: > { %p14_p8 = scmp.ge.s32.totalorder %s1654_s23, 4   ;;  %s1787_s20 = smov %s1563_s21 }
 0x233   : > { %s1788_s21 = smov %s1662_s26  ;;  %s1789_s22 = smov %s1654_s23 }
 0x234   :  { %16 = sbr.rel (!%p14_p8) target bundleno = 4 (0x4), region = 157 }
 0x23b   :  { %1047 = vsyncpa [#allocation4], 1 }
 0x23c   :  { %1049 = vsyncpa [#allocation4 + $0x1], 1 }

</bundles_post_ra>
